<compile_context>
chip_gen: v7x
topology: tpu7x:2x2x1
jax: 0.10.0
libtpu: 0.0.40
codegen_flags: <defaults>
</compile_context>

<pallas_src>
import functools

import jax
import jax.numpy as jnp
from jax.experimental import pallas as pl
from jax.experimental.pallas import tpu as pltpu


def _head_flash_kernel(xq_ref, xk_ref, wq_ref, wkv_ref, out_ref,
                       q_sc, m_sc, l_sc, acc_sc, *, head_size):
    H = head_size
    BB, TQ, C = xq_ref.shape
    TK = xk_ref.shape[1]
    qi = pl.program_id(1)
    ki = pl.program_id(2)
    nk = pl.num_programs(2)

    @pl.when(ki == 0)
    def _init():
        # Project queries once per (batch, query-block); fold 1/sqrt(H) into q.
        scale = jnp.float32(H) ** jnp.float32(-0.5)
        xq2 = xq_ref[...].reshape(BB * TQ, C)           # native dtype operand
        q = jnp.dot(xq2, wq_ref[...], preferred_element_type=jnp.float32)
        q_sc[...] = (q * scale).astype(q_sc.dtype).reshape(BB, TQ, H)
        m_sc[...] = jnp.full_like(m_sc, -jnp.inf)
        l_sc[...] = jnp.zeros_like(l_sc)
        acc_sc[...] = jnp.zeros_like(acc_sc)

    # Skip KV blocks that lie entirely in the future (fully causally masked).
    @pl.when(ki * TK <= qi * TQ + (TQ - 1))
    def _compute():
        # Fused K/V projection for this KV block: one MXU pass with N = 2H.
        xk2 = xk_ref[...].reshape(BB * TK, C)
        kv = jnp.dot(xk2, wkv_ref[...], preferred_element_type=jnp.float32)
        kv = kv.reshape(BB, TK, 2 * H)
        k = kv[:, :, :H].astype(xk_ref.dtype)
        v = kv[:, :, H:].astype(xk_ref.dtype)

        # Scores: contract the last dims directly (no transpose of k).
        s = jnp.einsum('bqh,bkh->bqk', q_sc[...], k,
                       preferred_element_type=jnp.float32)  # (BB, TQ, TK) f32

        rows = qi * TQ + jax.lax.broadcasted_iota(jnp.int32, (TQ, TK), 0)
        cols = ki * TK + jax.lax.broadcasted_iota(jnp.int32, (TQ, TK), 1)
        s = jnp.where((cols <= rows)[None, :, :], s, -jnp.inf)

        # Online softmax update (f32 elementwise math — also correct for v5e).
        m_prev = m_sc[...]
        m_new = jnp.maximum(m_prev, s.max(axis=-1, keepdims=True))
        alpha = jnp.exp(m_prev - m_new)
        p = jnp.exp(s - m_new)
        l_sc[...] = alpha * l_sc[...] + p.sum(axis=-1, keepdims=True)
        acc_sc[...] = alpha * acc_sc[...] + jnp.einsum(
            'bqk,bkh->bqh', p.astype(v.dtype), v,
            preferred_element_type=jnp.float32)
        m_sc[...] = m_new

    @pl.when(ki == nk - 1)
    def _finalize():
        inv_l = pl.reciprocal(l_sc[...], approx=True)   # EUP slot, near-free
        out_ref[...] = (acc_sc[...] * inv_l).astype(out_ref.dtype)


def head_forward(x, wq, wk, wv, head_size, *,
                 block_q=None, block_k=None, block_b=None):
    """x: (B, T, C); wq/wk/wv: (C, head_size). Returns (B, T, head_size)."""
    B, T, C = x.shape
    H = head_size
    assert wq.shape == (C, H) and wk.shape == (C, H) and wv.shape == (C, H)

    # Fuse K and V projection weights into one (C, 2H) matrix.
    wkv = jnp.concatenate([wk, wv], axis=1)

    if block_q is None:
        block_q = min(T, 128)
    if block_k is None:
        block_k = min(T, 128)
    if block_b is None:
        # Batch several elements per grid step when T is tiny to amortize the
        # ~0.35us per-step pipeline overhead.
        block_b = min(B, max(1, 128 // max(T, 1)))
        while B % block_b:
            block_b -= 1
    assert T % block_q == 0 and T % block_k == 0 and B % block_b == 0

    grid = (B // block_b, T // block_q, T // block_k)
    kernel = functools.partial(_head_flash_kernel, head_size=H)

    return pl.pallas_call(
        kernel,
        out_shape=jax.ShapeDtypeStruct((B, T, H), x.dtype),
        grid_spec=pltpu.PrefetchScalarGridSpec(
            num_scalar_prefetch=0,
            grid=grid,
            in_specs=[
                # x as query source (blocked over query tiles)
                pl.BlockSpec((block_b, block_q, C), lambda b, qi, ki: (b, qi, 0)),
                # x as key/value source (blocked over KV tiles)
                pl.BlockSpec((block_b, block_k, C), lambda b, qi, ki: (b, ki, 0)),
                pl.BlockSpec((C, H), lambda b, qi, ki: (0, 0)),
                pl.BlockSpec((C, 2 * H), lambda b, qi, ki: (0, 0)),
            ],
            out_specs=pl.BlockSpec((block_b, block_q, H),
                                   lambda b, qi, ki: (b, qi, 0)),
            scratch_shapes=[
                pltpu.VMEM((block_b, block_q, H), x.dtype),      # cached q
                pltpu.VMEM((block_b, block_q, 1), jnp.float32),  # running max
                pltpu.VMEM((block_b, block_q, 1), jnp.float32),  # running sum
                pltpu.VMEM((block_b, block_q, H), jnp.float32),  # accumulator
            ],
        ),
        compiler_params=pltpu.CompilerParams(
            dimension_semantics=("parallel", "parallel", "arbitrary"),
            # Tiles are budgeted for v7x's 64 MiB physical VMEM; raise the
            # scoped limit above the 32 MiB default with some headroom.
            vmem_limit_bytes=48 * 1024 * 1024,
        ),
    )(x, x, wq, wkv)


def head_reference(x, wq, wk, wv, head_size):
    """Pure-JAX reference matching the PyTorch forward (eval mode)."""
    q = x @ wq
    k = x @ wk
    v = x @ wv
    wei = (q @ jnp.swapaxes(k, -2, -1)) * head_size ** (-0.5)
    T = x.shape[1]
    tril = jnp.tril(jnp.ones((T, T), dtype=bool))
    wei = jnp.where(tril[None, :, :], wei, -jnp.inf)
    wei = jax.nn.softmax(wei, axis=-1)
    return wei @ v


if __name__ == "__main__":
    # Small shapes consistent with the module: batch=2, seq(T)=8, n_embd=32,
    # head_size=16, block_size >= T.
    B, T, n_embd, head_size = 2, 8, 32, 16

    key = jax.random.PRNGKey(0)
    kx, kq, kk, kv, kx2 = jax.random.split(key, 5)
    x = jax.random.normal(kx, (B, T, n_embd), dtype=jnp.float32)
    # Deterministic "Linear(bias=False)" weights, stored as (in, out).
    wq = jax.random.normal(kq, (n_embd, head_size), dtype=jnp.float32) * 0.02
    wk = jax.random.normal(kk, (n_embd, head_size), dtype=jnp.float32) * 0.02
    wv = jax.random.normal(kv, (n_embd, head_size), dtype=jnp.float32) * 0.02

    out = head_forward(x, wq, wk, wv, head_size)
    out = jax.block_until_ready(out)
    ref = head_reference(x, wq, wk, wv, head_size)
    assert out.shape == (B, T, head_size)
    # Tolerance accounts for the approximate (EUP) reciprocal in the softmax
    # normalization; this is still far tighter than any masking/formula error.
    assert jnp.allclose(out, ref, atol=1e-2, rtol=1e-2), "mismatch vs reference"

    # Second check: exercise the multi-block flash path (online softmax,
    # causal block skipping) with a longer sequence and 128-wide tiles.
    T2 = 256
    x2 = jax.random.normal(kx2, (B, T2, n_embd), dtype=jnp.float32)
    out2 = jax.block_until_ready(
        head_forward(x2, wq, wk, wv, head_size, block_q=128, block_k=128))
    ref2 = head_reference(x2, wq, wk, wv, head_size)
    assert jnp.allclose(out2, ref2, atol=1e-2, rtol=1e-2), "mismatch (tiled)"

    print("KERNEL_OK")
</pallas_src>

<mosaic_0001>
module attributes {stable_mosaic.version = 11 : i64} {
  func.func @_head_flash_kernel(%arg0: i32, %arg1: i32, %arg2: i32, %arg3: memref<2x8x32xf32, #tpu.memory_space<vmem>>, %arg4: memref<2x8x32xf32, #tpu.memory_space<vmem>>, %arg5: memref<32x16xf32, #tpu.memory_space<vmem>>, %arg6: memref<32x32xf32, #tpu.memory_space<vmem>>, %arg7: memref<2x8x16xf32, #tpu.memory_space<vmem>>, %arg8: memref<2x8x16xf32, #tpu.memory_space<vmem>>, %arg9: memref<2x8x1xf32, #tpu.memory_space<vmem>>, %arg10: memref<2x8x1xf32, #tpu.memory_space<vmem>>, %arg11: memref<2x8x16xf32, #tpu.memory_space<vmem>>) attributes {dimension_semantics = [#tpu.dimension_semantics<parallel>, #tpu.dimension_semantics<parallel>, #tpu.dimension_semantics<arbitrary>], iteration_bounds = array<i64: 1, 1, 1>, scalar_prefetch = 0 : i64, scratch_operands = 4 : i64, tpu.core_type = #tpu.core_type<tc>, window_params = [{transform_indices = @transform_0, window_bounds = array<i64: 2, 8, 32>}, {transform_indices = @transform_1, window_bounds = array<i64: 2, 8, 32>}, {pipeline_mode = #tpu.pipeline_mode<synchronous>, transform_indices = @transform_2, window_bounds = array<i64: 32, 16>}, {pipeline_mode = #tpu.pipeline_mode<synchronous>, transform_indices = @transform_3, window_bounds = array<i64: 32, 32>}, {transform_indices = @transform_4, window_bounds = array<i64: 2, 8, 16>}]} {
    %c0_i32 = arith.constant 0 : i32
    %0 = arith.cmpi eq, %arg2, %c0_i32 : i32
    %1 = arith.extui %0 : i1 to i32
    %c0_i32_0 = arith.constant 0 : i32
    %2 = arith.cmpi ne, %1, %c0_i32_0 : i32
    scf.if %2 {
      %cst = arith.constant 1.600000e+01 : f32
      %cst_5 = arith.constant -5.000000e-01 : f32
      %12 = math.powf %cst, %cst_5 : f32
      %c0 = arith.constant 0 : index
      %c0_6 = arith.constant 0 : index
      %c0_7 = arith.constant 0 : index
      %13 = vector.load %arg3[%c0, %c0_6, %c0_7] : memref<2x8x32xf32, #tpu.memory_space<vmem>>, vector<2x8x32xf32>
      %14 = vector.shape_cast %13 : vector<2x8x32xf32> to vector<16x32xf32>
      %c0_8 = arith.constant 0 : index
      %c0_9 = arith.constant 0 : index
      %15 = vector.load %arg5[%c0_8, %c0_9] : memref<32x16xf32, #tpu.memory_space<vmem>>, vector<32x16xf32>
      %cst_10 = arith.constant dense<0.000000e+00> : vector<16x16xf32>
      %16 = tpu.matmul %14, %15, %cst_10 {dimension_numbers = #tpu.dot_dimension_numbers<[1], [0], [0], [1], [0, 0, 1, 1], [], []>} : vector<16x32xf32>, vector<32x16xf32>, vector<16x16xf32> -> vector<16x16xf32>
      %17 = vector.broadcast %12 : f32 to vector<16x16xf32>
      %18 = arith.mulf %16, %17 : vector<16x16xf32>
      %19 = vector.shape_cast %18 : vector<16x16xf32> to vector<2x8x16xf32>
      %c0_11 = arith.constant 0 : index
      %c0_12 = arith.constant 0 : index
      %c0_13 = arith.constant 0 : index
      %20 = vector.load %arg8[%c0_11, %c0_12, %c0_13] : memref<2x8x16xf32, #tpu.memory_space<vmem>>, vector<2x8x16xf32>
      tpu.vector_store %arg8[%c0_11, %c0_12, %c0_13], %19 {strides = array<i32>} : memref<2x8x16xf32, #tpu.memory_space<vmem>>, vector<2x8x16xf32>,
      %cst_14 = arith.constant 0xFF800000 : f32
      %21 = vector.broadcast %cst_14 : f32 to vector<2x8x1xf32>
      %c0_15 = arith.constant 0 : index
      %c0_16 = arith.constant 0 : index
      %c0_17 = arith.constant 0 : index
      %22 = vector.load %arg9[%c0_15, %c0_16, %c0_17] : memref<2x8x1xf32, #tpu.memory_space<vmem>>, vector<2x8x1xf32>
      tpu.vector_store %arg9[%c0_15, %c0_16, %c0_17], %21 {strides = array<i32>} : memref<2x8x1xf32, #tpu.memory_space<vmem>>, vector<2x8x1xf32>,
      %cst_18 = arith.constant 0.000000e+00 : f32
      %23 = vector.broadcast %cst_18 : f32 to vector<2x8x1xf32>
      %c0_19 = arith.constant 0 : index
      %c0_20 = arith.constant 0 : index
      %c0_21 = arith.constant 0 : index
      %24 = vector.load %arg10[%c0_19, %c0_20, %c0_21] : memref<2x8x1xf32, #tpu.memory_space<vmem>>, vector<2x8x1xf32>
      tpu.vector_store %arg10[%c0_19, %c0_20, %c0_21], %23 {strides = array<i32>} : memref<2x8x1xf32, #tpu.memory_space<vmem>>, vector<2x8x1xf32>,
      %cst_22 = arith.constant 0.000000e+00 : f32
      %25 = vector.broadcast %cst_22 : f32 to vector<2x8x16xf32>
      %c0_23 = arith.constant 0 : index
      %c0_24 = arith.constant 0 : index
      %c0_25 = arith.constant 0 : index
      %26 = vector.load %arg11[%c0_23, %c0_24, %c0_25] : memref<2x8x16xf32, #tpu.memory_space<vmem>>, vector<2x8x16xf32>
      tpu.vector_store %arg11[%c0_23, %c0_24, %c0_25], %25 {strides = array<i32>} : memref<2x8x16xf32, #tpu.memory_space<vmem>>, vector<2x8x16xf32>,
    } else {
    }
    %c8_i32 = arith.constant 8 : i32
    %3 = arith.muli %arg2, %c8_i32 : i32
    %c8_i32_1 = arith.constant 8 : i32
    %4 = arith.muli %arg1, %c8_i32_1 : i32
    %c7_i32 = arith.constant 7 : i32
    %5 = arith.addi %4, %c7_i32 : i32
    %6 = arith.cmpi sle, %3, %5 : i32
    %7 = arith.extui %6 : i1 to i32
    %c0_i32_2 = arith.constant 0 : i32
    %8 = arith.cmpi ne, %7, %c0_i32_2 : i32
    scf.if %8 {
      %c0 = arith.constant 0 : index
      %c0_5 = arith.constant 0 : index
      %c0_6 = arith.constant 0 : index
      %12 = vector.load %arg4[%c0, %c0_5, %c0_6] : memref<2x8x32xf32, #tpu.memory_space<vmem>>, vector<2x8x32xf32>
      %13 = vector.shape_cast %12 : vector<2x8x32xf32> to vector<16x32xf32>
      %c0_7 = arith.constant 0 : index
      %c0_8 = arith.constant 0 : index
      %14 = vector.load %arg6[%c0_7, %c0_8] : memref<32x32xf32, #tpu.memory_space<vmem>>, vector<32x32xf32>
      %cst = arith.constant dense<0.000000e+00> : vector<16x32xf32>
      %15 = tpu.matmul %13, %14, %cst {dimension_numbers = #tpu.dot_dimension_numbers<[1], [0], [0], [1], [0, 0, 1, 1], [], []>} : vector<16x32xf32>, vector<32x32xf32>, vector<16x32xf32> -> vector<16x32xf32>
      %16 = vector.shape_cast %15 : vector<16x32xf32> to vector<2x8x32xf32>
      %17 = vector.extract_strided_slice %16 {offsets = [0, 0, 0], sizes = [2, 8, 16], strides = [1, 1, 1]} : vector<2x8x32xf32> to vector<2x8x16xf32>
      %18 = vector.extract_strided_slice %16 {offsets = [0, 0, 16], sizes = [2, 8, 16], strides = [1, 1, 1]} : vector<2x8x32xf32> to vector<2x8x16xf32>
      %c0_9 = arith.constant 0 : index
      %c0_10 = arith.constant 0 : index
      %c0_11 = arith.constant 0 : index
      %19 = vector.load %arg8[%c0_9, %c0_10, %c0_11] : memref<2x8x16xf32, #tpu.memory_space<vmem>>, vector<2x8x16xf32>
      "tpu.trace_start"() <{level = 10 : i32, message = "bqh,bkh->bqk"}> : () -> ()
      %cst_12 = arith.constant dense<0.000000e+00> : vector<2x8x8xf32>
      %20 = tpu.matmul %19, %17, %cst_12 {dimension_numbers = #tpu.dot_dimension_numbers<[2], [2], [1], [1], [0, 0, 0, 1, 1, 1], [0], [0]>} : vector<2x8x16xf32>, vector<2x8x16xf32>, vector<2x8x8xf32> -> vector<2x8x8xf32>
      "tpu.trace_stop"() : () -> ()
      %c8_i32_13 = arith.constant 8 : i32
      %21 = arith.muli %arg1, %c8_i32_13 : i32
      %22 = tpu.iota {dimensions = array<i32: 0>} : vector<8x8xi32>
      %23 = vector.broadcast %21 : i32 to vector<8x8xi32>
      %24 = arith.addi %23, %22 : vector<8x8xi32>
      %c8_i32_14 = arith.constant 8 : i32
      %25 = arith.muli %arg2, %c8_i32_14 : i32
      %26 = tpu.iota {dimensions = array<i32: 1>} : vector<8x8xi32>
      %27 = vector.broadcast %25 : i32 to vector<8x8xi32>
      %28 = arith.addi %27, %26 : vector<8x8xi32>
      %29 = arith.cmpi sle, %28, %24 : vector<8x8xi32>
      %30 = vector.shape_cast %29 : vector<8x8xi1> to vector<1x8x8xi1>
      %cst_15 = arith.constant 0xFF800000 : f32
      %31 = vector.shape_cast %30 : vector<1x8x8xi1> to vector<1x8x8xi1>
      %32 = vector.broadcast %31 : vector<1x8x8xi1> to vector<2x8x8xi1>
      %33 = vector.broadcast %cst_15 : f32 to vector<2x8x8xf32>
      %34 = arith.select %32, %20, %33 : vector<2x8x8xi1>, vector<2x8x8xf32>
      %c0_16 = arith.constant 0 : index
      %c0_17 = arith.constant 0 : index
      %c0_18 = arith.constant 0 : index
      %35 = vector.load %arg9[%c0_16, %c0_17, %c0_18] : memref<2x8x1xf32, #tpu.memory_space<vmem>>, vector<2x8x1xf32>
      %cst_19 = arith.constant dense<0xFF800000> : vector<2x8xf32>
      %36 = vector.multi_reduction <maximumf>, %34, %cst_19 [2] : vector<2x8x8xf32> to vector<2x8xf32>
      %37 = vector.shape_cast %36 : vector<2x8xf32> to vector<2x8x1xf32>
      %38 = arith.maximumf %35, %37 : vector<2x8x1xf32>
      %39 = arith.subf %35, %38 : vector<2x8x1xf32>
      %40 = math.exp %39 : vector<2x8x1xf32>
      %41 = vector.broadcast %38 : vector<2x8x1xf32> to vector<2x8x8xf32>
      %42 = arith.subf %34, %41 : vector<2x8x8xf32>
      %43 = math.exp %42 : vector<2x8x8xf32>
      %c0_20 = arith.constant 0 : index
      %c0_21 = arith.constant 0 : index
      %c0_22 = arith.constant 0 : index
      %44 = vector.load %arg10[%c0_20, %c0_21, %c0_22] : memref<2x8x1xf32, #tpu.memory_space<vmem>>, vector<2x8x1xf32>
      %45 = arith.mulf %40, %44 : vector<2x8x1xf32>
      %cst_23 = arith.constant dense<0.000000e+00> : vector<2x8xf32>
      %46 = vector.multi_reduction <add>, %43, %cst_23 [2] : vector<2x8x8xf32> to vector<2x8xf32>
      %47 = vector.shape_cast %46 : vector<2x8xf32> to vector<2x8x1xf32>
      %48 = arith.addf %45, %47 : vector<2x8x1xf32>
      %c0_24 = arith.constant 0 : index
      %c0_25 = arith.constant 0 : index
      %c0_26 = arith.constant 0 : index
      %49 = vector.load %arg10[%c0_24, %c0_25, %c0_26] : memref<2x8x1xf32, #tpu.memory_space<vmem>>, vector<2x8x1xf32>
      tpu.vector_store %arg10[%c0_24, %c0_25, %c0_26], %48 {strides = array<i32>} : memref<2x8x1xf32, #tpu.memory_space<vmem>>, vector<2x8x1xf32>,
      %c0_27 = arith.constant 0 : index
      %c0_28 = arith.constant 0 : index
      %c0_29 = arith.constant 0 : index
      %50 = vector.load %arg11[%c0_27, %c0_28, %c0_29] : memref<2x8x16xf32, #tpu.memory_space<vmem>>, vector<2x8x16xf32>
      %51 = vector.broadcast %40 : vector<2x8x1xf32> to vector<2x8x16xf32>
      %52 = arith.mulf %51, %50 : vector<2x8x16xf32>
      "tpu.trace_start"() <{level = 10 : i32, message = "bqk,bkh->bqh"}> : () -> ()
      %cst_30 = arith.constant dense<0.000000e+00> : vector<2x8x16xf32>
      %53 = tpu.matmul %43, %18, %cst_30 {dimension_numbers = #tpu.dot_dimension_numbers<[2], [1], [1], [2], [0, 0, 0, 1, 1, 2], [0], [0]>} : vector<2x8x8xf32>, vector<2x8x16xf32>, vector<2x8x16xf32> -> vector<2x8x16xf32>
      "tpu.trace_stop"() : () -> ()
      %54 = arith.addf %52, %53 : vector<2x8x16xf32>
      %c0_31 = arith.constant 0 : index
      %c0_32 = arith.constant 0 : index
      %c0_33 = arith.constant 0 : index
      %55 = vector.load %arg11[%c0_31, %c0_32, %c0_33] : memref<2x8x16xf32, #tpu.memory_space<vmem>>, vector<2x8x16xf32>
      tpu.vector_store %arg11[%c0_31, %c0_32, %c0_33], %54 {strides = array<i32>} : memref<2x8x16xf32, #tpu.memory_space<vmem>>, vector<2x8x16xf32>,
      %c0_34 = arith.constant 0 : index
      %c0_35 = arith.constant 0 : index
      %c0_36 = arith.constant 0 : index
      %56 = vector.load %arg9[%c0_34, %c0_35, %c0_36] : memref<2x8x1xf32, #tpu.memory_space<vmem>>, vector<2x8x1xf32>
      tpu.vector_store %arg9[%c0_34, %c0_35, %c0_36], %38 {strides = array<i32>} : memref<2x8x1xf32, #tpu.memory_space<vmem>>, vector<2x8x1xf32>,
    } else {
    }
    %c0_i32_3 = arith.constant 0 : i32
    %9 = arith.cmpi eq, %arg2, %c0_i32_3 : i32
    %10 = arith.extui %9 : i1 to i32
    %c0_i32_4 = arith.constant 0 : i32
    %11 = arith.cmpi ne, %10, %c0_i32_4 : i32
    scf.if %11 {
      %c0 = arith.constant 0 : index
      %c0_5 = arith.constant 0 : index
      %c0_6 = arith.constant 0 : index
      %12 = vector.load %arg10[%c0, %c0_5, %c0_6] : memref<2x8x1xf32, #tpu.memory_space<vmem>>, vector<2x8x1xf32>
      %13 = tpu.reciprocal %12 {approx = true} : vector<2x8x1xf32> -> vector<2x8x1xf32>
      %c0_7 = arith.constant 0 : index
      %c0_8 = arith.constant 0 : index
      %c0_9 = arith.constant 0 : index
      %14 = vector.load %arg11[%c0_7, %c0_8, %c0_9] : memref<2x8x16xf32, #tpu.memory_space<vmem>>, vector<2x8x16xf32>
      %15 = vector.broadcast %13 : vector<2x8x1xf32> to vector<2x8x16xf32>
      %16 = arith.mulf %14, %15 : vector<2x8x16xf32>
      %c0_10 = arith.constant 0 : index
      %c0_11 = arith.constant 0 : index
      %c0_12 = arith.constant 0 : index
      %17 = vector.load %arg7[%c0_10, %c0_11, %c0_12] : memref<2x8x16xf32, #tpu.memory_space<vmem>>, vector<2x8x16xf32>
      tpu.vector_store %arg7[%c0_10, %c0_11, %c0_12], %16 {strides = array<i32>} : memref<2x8x16xf32, #tpu.memory_space<vmem>>, vector<2x8x16xf32>,
    } else {
    }
    return
  }
  func.func @transform_0(%arg0: i32, %arg1: i32, %arg2: i32) -> (i32, i32, i32) {
    %c0_i32 = arith.constant 0 : i32
    %c0_i32_0 = arith.constant 0 : i32
    return %arg0, %arg1, %c0_i32 : i32, i32, i32
  }
  func.func @transform_1(%arg0: i32, %arg1: i32, %arg2: i32) -> (i32, i32, i32) {
    %c0_i32 = arith.constant 0 : i32
    %c0_i32_0 = arith.constant 0 : i32
    return %arg0, %arg2, %c0_i32 : i32, i32, i32
  }
  func.func @transform_2(%arg0: i32, %arg1: i32, %arg2: i32) -> (i32, i32) {
    %c0_i32 = arith.constant 0 : i32
    %c0_i32_0 = arith.constant 0 : i32
    %c0_i32_1 = arith.constant 0 : i32
    return %c0_i32, %c0_i32_0 : i32, i32
  }
  func.func @transform_3(%arg0: i32, %arg1: i32, %arg2: i32) -> (i32, i32) {
    %c0_i32 = arith.constant 0 : i32
    %c0_i32_0 = arith.constant 0 : i32
    %c0_i32_1 = arith.constant 0 : i32
    return %c0_i32, %c0_i32_0 : i32, i32
  }
  func.func @transform_4(%arg0: i32, %arg1: i32, %arg2: i32) -> (i32, i32, i32) {
    %c0_i32 = arith.constant 0 : i32
    %c0_i32_0 = arith.constant 0 : i32
    return %arg0, %arg1, %c0_i32 : i32, i32, i32
  }
}

</mosaic_0001>

<bundles_post_ra>
// kernel: tpu_custom_call.1
= control target key start
LH: loop header
LB: loop body
LE: loop exit
PB: predicated region body
PF: predicated region fallthrough
CT: control target
= control target key end

     0   :  { %9 = vsyncpa [#allocation7], 0  ;;  %s947_s0 = inlined_call_operand.vmem [shape: f32[2,8,32], index: 0, kind: input, shape index: {}]   ;;  %s948_s1 = inlined_call_operand.hbm [shape: f32[2,8,32], index: 1, kind: input, shape index: {}]   ;;  %s949_s2 = inlined_call_operand.vmem [shape: f32[32,16], index: 2, kind: input, shape index: {}]   ;;  %s950_s3 = inlined_call_operand.vmem [shape: f32[32,32], index: 3, kind: input, shape index: {}]   ;;  %s951_s4 = inlined_call_operand.hbm [shape: f32[2,8,16], index: 4, kind: output, shape index: {}]  }
   0x1   :  { %10 = vsyncpa [#allocation8], 0  ;;  %s819_s15 = smov [#allocation6]   ;;  %s771_s19 = scalar_lea.hbm %s948_s1, 256 }
   0x2   :  { %s18_s16 = sshll.u32 %s819_s15, 4  ;;  %p772_p0 = scmp.ne.s32.totalorder %s948_s1, %s771_s19  ;;  %s19_s16 = int_to_ptr.vmem [resolvable:$true] %s18_s16 }
   0x3   :  { %p775_p1 = scmp.lt.u32.totalorder %s771_s19, %s948_s1 }
   0x5   :  { %p777_p2 = pnand %p775_p1, %p772_p0 }
   0x7   :  { %780 = shalt.err (!%p777_p2)
}
   0x8   :  { %s781_s24 = scalar_lea.vmem %s19_s16, 256  ;;  %p786_p4 = scmp.lt.s32.totalorder %s19_s16, %s19_s16 }
   0x9   :  { %p782_p3 = scmp.ne.s32.totalorder %s19_s16, %s781_s24  ;;  %p787_p5 = scmp.lt.s32.totalorder %s781_s24, %s781_s24 }
   0xb   :  { %p788_p6 = por %p787_p5, %p786_p4 }
   0xd   :  { %p789_p7 = pnand %p788_p6, %p782_p3 }
   0xf   :  { %792 = shalt.err (!%p789_p7)
}
  0x10   :  { %s820_s25 = smov 128   ;;  %s821_s26 = smov 8  }
  0x11   :  { %24 = dma.hbm_to_vmem [thread:$0]  %s948_s1, 256, %s19_s16, [#allocation7], %s820_s25, %s820_s25, %s821_s26  }
  0x12   :  { %815 = dma.done.wait [#allocation7], 256  }
  0x13   :  { %816 = vsyncadd [#allocation7], 4294967040  ;;  %v38_v0 = vld [vmem:[%s949_s2] sm:$0xff]  ;;  %v39_v1 = vld [vmem:[%s949_s2 + $0x8] sm:$0xff]  ;;  %vm42_vm0 = vcmask 261120   ;;  %vm126_vm1 = vcmask 130048   ;;  %v386_v26 = vlaneseq }
  0x14   :  { %v40_v2 = vld [vmem:[%s949_s2 + $0x10] sm:$0xff]  ;;  %v732_v3 = vpack.c.bf16 %v39_v1, %v38_v0  ;;  %v41_v4 = vld [vmem:[%s949_s2 + $0x18] sm:$0xff]  ;;  %v145_v5 = vld [vmem:[%s950_s3] sm:$0xff]  ;;  %v822_v16 = vmov 0.0   ;;  %vm823_vm2 = vmmov 0   ;;  %vm129_vm3 = vcmask 7168  }
  0x15   :  { %v146_v6 = vld [vmem:[%s950_s3 + $0x8] sm:$0xff]  ;;  %v736_v7 = vpack.c.bf16 %v41_v4, %v40_v2  ;;  %v36_v9 = vld [vmem:[%s947_s0] sm:$0xff]  ;;  %v147_v10 = vld [vmem:[%s950_s3 + $0x10] sm:$0xff]  ;;  %134 = vst.msk [vmem:[#allocation5] sm:$0xff] %vm126_vm1, %v822_v16  ;;  %v824_v25 = vmov -inf   ;;  %v387_v27 = vshrl.u32 %v386_v26, 7 }
  0x16   :  { %v740_v8 = vpack.c.bf16 %v146_v6, %v145_v5  ;;  %733 = vmatprep.subr.bf16.mxu0 %v732_v3  ;;  %698 = vmatprep.mubr.msk.f32.mxu0 %vm42_vm0, %v36_v9  ;;  %v148_v11 = vld [vmem:[%s950_s3 + $0x18] sm:$0xff]  ;;  %v143_v12 = vld [vmem:[#allocation6] sm:$0xff]  ;;  %v37_v14 = vld [vmem:[%s947_s0 + $0x8] sm:$0xff]  ;;  %135 = vst.msk [vmem:[#allocation5 + $0x8] sm:$0xff] %vm126_vm1, %v822_v16  ;;  %v391_v28 = vand.u32 127, %v386_v26  ;;  %vm401_vm5 = vcmask 64512  }
  0x17   :  { %735 = vmatpush3.bf16.msra.mxu0 %v732_v3  ;;  %v744_v13 = vpack.c.bf16 %v148_v11, %v147_v10  ;;  %709 = vmatprep.mubr.msk.f32.mxu1 %vm42_vm0, %v143_v12  ;;  %v144_v15 = vld [vmem:[#allocation6 + $0x8] sm:$0xff]  ;;  %130 = vst.msk [vmem:[#allocation3] sm:$0xff] %vm129_vm3, %v824_v25  ;;  %131 = vst.msk [vmem:[#allocation3 + $0x8] sm:$0xff] %vm129_vm3, %v824_v25  ;;  %v825_v37 = vmov 0   ;;  %s826_s0 = smov 112   ;;  %s827_s3 = smov [#allocation9]  }
  0x18   :  { %741 = vmatprep.subr.bf16.mxu1 %v740_v8  ;;  %737 = vmatprep.subr.bf16.mxu0 %v736_v7  ;;  %132 = vst.msk [vmem:[#allocation4] sm:$0xff] %vm129_vm3, %v822_v16  ;;  %133 = vst.msk [vmem:[#allocation4 + $0x8] sm:$0xff] %vm129_vm3, %v822_v16  ;;  %vm394_vm4 = vcmp.le.s32.totalorder %v391_v28, %v387_v27  ;;  %s648_s21 = sshll.u32 %s827_s3, 4  ;;  %s649_s21 = int_to_ptr.vmem [resolvable:$true] %s648_s21 }
  0x19   :  { %743 = vmatpush3.bf16.msra.mxu1 %v740_v8  ;;  %757 = vset.pattern.permute.xlu1 %v825_v37  ;;  %s793_s22 = scalar_lea.vmem %s649_s21, 256  ;;  %p798_p9 = scmp.lt.s32.totalorder %s649_s21, %s649_s21 }
  0x1a   :  { %745 = vmatprep.subr.bf16.mxu1 %v744_v13  ;;  %758 = vset.pattern.permute.xlu0 %v825_v37  ;;  %p794_p8 = scmp.ne.s32.totalorder %s649_s21, %s793_s22  ;;  %p799_p10 = scmp.lt.s32.totalorder %s793_s22, %s793_s22 }
  0x1b   :  { %739 = vmatpush3.bf16.msra.mxu0 %v736_v7 }
  0x1c   :  { %712 = vmatprep.subr.mxu0 %v822_v16  ;;  %v447_v10 = vld [vmem:[#allocation5] sm:$0xff]  ;;  %p800_p11 = por %p799_p10, %p798_p9 }
  0x1d   :  { %747 = vmatpush3.bf16.msra.mxu1 %v744_v13  ;;  %v448_v13 = vld [vmem:[#allocation5 + $0x8] sm:$0xff] }
  0x1e   :  { %699 = vmatmul.mubr.msk.f32.vlgmr.msra.gmra.mrb[0].mxu0 %vm42_vm0, %v37_v14  ;;  %717 = vmatprep.subr.mxu1 %v822_v16  ;;  %v399_v38 = vld [vmem:[#allocation3] sm:$0xff]  ;;  %v400_v41 = vld [vmem:[#allocation3 + $0x8] sm:$0xff]  ;;  %p801_p12 = pnand %p800_p11, %p794_p8 }
  0x1f   :  { %714 = vmatprep.mubr.msk.f32.mxu0 %vm823_vm2, %v822_v16  ;;  %v432_v62 = vld [vmem:[#allocation4] sm:$0xff]  ;;  %v433_v1 = vld [vmem:[#allocation4 + $0x8] sm:$0xff] }
  0x20   :  { %710 = vmatmul.mubr.msk.f32.vlgmr.msra.gmra.mrb[0].mxu1 %vm42_vm0, %v144_v15 }
  0x21   :  { %719 = vmatprep.mubr.msk.f32.mxu1 %vm823_vm2, %v822_v16 }
  0xf1   :  { %v700_v17 = vpop.f32.mrb[0].mxu0 }
  0xf2   :  { %v125_v18 = vmul.f32 0.25, %v700_v17  ;;  %v115_v19 = vpop.f32.mrb[1].mxu0 }
  0xf3   :  { %v711_v20 = vpop.f32.mrb[0].mxu1  ;;  %v124_v21 = vmul.f32 0.25, %v115_v19 }
  0xf4   :  { %v222_v22 = vpop.f32.mrb[1].mxu1  ;;  %718 = vmatpush3.xpose.msk.msra.mxu1 %vm126_vm1, %v711_v20  ;;  %128 = vst.msk [vmem:[#allocation2 + $0x8] sm:$0xff] %vm126_vm1, %v125_v18 }
  0xf5   :  { %713 = vmatpush3.xpose.msk.msra.mxu0 %vm126_vm1, %v222_v22  ;;  %727 = vmatprep.subr.mxu1 %v822_v16  ;;  %127 = vst.msk [vmem:[#allocation2] sm:$0xff] %vm126_vm1, %v124_v21 }
  0xf6   :  { %722 = vmatprep.subr.mxu0 %v822_v16 }
  0xfb   :  { %v232_v23 = vld [vmem:[#allocation2 + $0x8] sm:$0xff] }
  0xfc   :  { %720 = vmatmul.mubr.msk.f32.vlgmr.msra.gmra.mrb[2].mxu1 %vm126_vm1, %v232_v23  ;;  %v231_v24 = vld [vmem:[#allocation2] sm:$0xff] }
  0xfd   :  { %715 = vmatmul.mubr.msk.f32.vlgmr.msra.gmra.mrb[2].mxu0 %vm126_vm1, %v231_v24  ;;  %729 = vmatprep.mubr.msk.f32.mxu1 %vm823_vm2, %v822_v16 }
  0xfe   :  { %724 = vmatprep.mubr.msk.f32.mxu0 %vm823_vm2, %v822_v16 }
 0x1cf   :  { %v382_v29 = vpop.f32.mrb[2].mxu1 }
 0x1d0   :  { %v306_v30 = vpop.f32.mrb[2].mxu0  ;;  %v721_v31 = vpop.f32.mrb[3].mxu1  ;;  %v398_v35 = vsel %vm394_vm4, %v382_v29, -inf }
 0x1d1   :  { %v397_v32 = vsel %vm394_vm4, %v306_v30, -inf  ;;  %v716_v33 = vpop.f32.mrb[3].mxu0  ;;  %v405_v36 = vsel %vm401_vm5, %v398_v35, -inf }
 0x1d2   :  { %v402_v34 = vsel %vm401_vm5, %v397_v32, -inf }
 0x1d3   :  { %403 = vmax.xlane.f32.xlu0 %v402_v34 }
 0x1d7   :  { %406 = vmax.xlane.f32.xlu0 %v405_v36 }
 0x1ed   :  { %461 = vrot.lane.b32.xlu0 %v222_v22, %s826_s0 }
 0x260   :  { %v404_v39 = vpop.xlane.xlu0 %403 }
 0x261   :  { %v408_v40 = vmax.f32 %v399_v38, %v404_v39 }
 0x263   :  { %v410_v42 = vsub.f32 %v399_v38, %v408_v40  ;;  %617 = vst.msk [vmem:[#allocation3] sm:$0xff] %vm129_vm3, %v408_v40  ;;  %418 = vperm.xlu1 %757, %v408_v40  }
 0x264   :  { %v407_v43 = vpop.xlane.xlu0 %406 }
 0x265   :  { %v409_v44 = vmax.f32 %v400_v41, %v407_v43  ;;  %v412_v57 = vmul.f32 1.442695, %v410_v42 }
 0x267   :  { %v411_v45 = vsub.f32 %v400_v41, %v409_v44  ;;  %618 = vst.msk [vmem:[#allocation3 + $0x8] sm:$0xff] %vm129_vm3, %v409_v44  ;;  %423 = vperm.xlu1 %757, %v409_v44  }
 0x268   :  { %v462_v46 = vpop.permute.xlu0 %461 }
 0x269   :  { %723 = vmatpush3.msra.mxu0 %v462_v46  ;;  %v414_v59 = vmul.f32 1.442695, %v411_v45 }
 0x26b   :  { %537 = vrot.lane.b32.xlu1 %v711_v20, %s826_s0 }
 0x2e2   :  { %v419_v47 = vpop.permute.xlu1 %418 }
 0x2e3   :  { %v426_v48 = vsub.f32 %v397_v32, %v419_v47 }
 0x2e5   :  { %v428_v49 = vmul.f32 1.442695, %v426_v48 }
 0x2e6   :  { %v424_v50 = vpop.permute.xlu1 %423 }
 0x2e7   :  { %759 = vpow2.f32 %v428_v49  ;;  %v427_v51 = vsub.f32 %v398_v35, %v424_v50 }
 0x2e9   :  { %v430_v52 = vmul.f32 1.442695, %v427_v51 }
 0x2ea   :  { %v538_v53 = vpop.permute.xlu1 %537 }
 0x2eb   :  { %761 = vpow2.f32 %v430_v52  ;;  %728 = vmatpush3.msra.mxu1 %v538_v53 }
 0x2ec   :  { %763 = vpow2.f32 %v412_v57 }
 0x2ed   :  { %765 = vpow2.f32 %v414_v59 }
 0x2f1   :  { %v760_v54 = vpop.eup %759 }
 0x2f2   :  { %725 = vmatmul.mubr.msk.f32.vlgmr.msra.gmra.mrb[4].mxu0 %vm401_vm5, %v760_v54  ;;  %v436_v55 = vsel %vm401_vm5, %v760_v54, 0.0 }
 0x2f3   :  { %437 = vadd.xlane.f32.xlu1 %v436_v55 }
 0x2f5   :  { %v762_v56 = vpop.eup %761 }
 0x2f6   :  { %730 = vmatmul.mubr.msk.f32.vlgmr.msra.gmra.mrb[4].mxu1 %vm401_vm5, %v762_v56  ;;  %v439_v58 = vsel %vm401_vm5, %v762_v56, 0.0  ;;  %v764_v60 = vpop.eup %763 }
 0x2f7   :  { %440 = vadd.xlane.f32.xlu0 %v439_v58  ;;  %v766_v61 = vpop.eup %765  ;;  %v434_v63 = vmul.f32 %v764_v60, %v432_v62 }
 0x2f8   :  { %v435_v3 = vmul.f32 %v766_v61, %v433_v1 }
 0x304   :  { %451 = vperm.xlu1 %757, %v764_v60  }
 0x30d   :  { %456 = vperm.xlu0 %758, %v766_v61  }
 0x380   :  { %v438_v0 = vpop.xlane.xlu1 %437 }
 0x381   :  { %v442_v2 = vadd.f32 %v438_v0, %v434_v63 }
 0x383   :  { %445 = vst.msk [vmem:[#allocation4] sm:$0xff] %vm129_vm3, %v442_v2 }
 0x384   :  { %v441_v4 = vpop.xlane.xlu0 %440  ;;  %v452_v11 = vpop.permute.xlu1 %451 }
 0x385   :  { %v443_v5 = vadd.f32 %v441_v4, %v435_v3  ;;  %v459_v12 = vmul.f32 %v452_v11, %v447_v10 }
 0x387   :  { %446 = vst.msk [vmem:[#allocation4 + $0x8] sm:$0xff] %vm129_vm3, %v443_v5 }
 0x38a   :  { %v622_v6 = vld [vmem:[#allocation4] sm:$0xff] }
 0x38b   :  { %767 = vrcp.f32 %v622_v6 }
 0x38c   :  { %v457_v14 = vpop.permute.xlu0 %456 }
 0x38d   :  { %v460_v18 = vmul.f32 %v457_v14, %v448_v13 }
 0x38e   :  { %v623_v7 = vld [vmem:[#allocation4 + $0x8] sm:$0xff] }
 0x38f   :  { %769 = vrcp.f32 %v623_v7 }
 0x395   :  { %v768_v8 = vpop.eup %767 }
 0x396   :  { %630 = vperm.xlu1 %757, %v768_v8  }
 0x399   :  { %v770_v9 = vpop.eup %769 }
 0x39a   :  { %635 = vperm.xlu1 %757, %v770_v9  }
 0x3c5   :  { %v533_v15 = vpop.f32.mrb[4].mxu0 }
 0x3c6   :  { %v613_v16 = vadd.f32 %v533_v15, %v459_v12  ;;  %v726_v17 = vpop.f32.mrb[5].mxu0 }
 0x3c8   :  { %615 = vst.msk [vmem:[#allocation5] sm:$0xff] %vm126_vm1, %v613_v16 }
 0x3c9   :  { %v609_v19 = vpop.f32.mrb[4].mxu1 }
 0x3ca   :  { %v614_v20 = vadd.f32 %v609_v19, %v460_v18  ;;  %v731_v21 = vpop.f32.mrb[5].mxu1 }
 0x3cc   :  { %616 = vst.msk [vmem:[#allocation5 + $0x8] sm:$0xff] %vm126_vm1, %v614_v20 }
 0x3cf   :  { %v626_v23 = vld [vmem:[#allocation5] sm:$0xff] }
 0x3d3   :  { %v627_v26 = vld [vmem:[#allocation5 + $0x8] sm:$0xff] }
 0x415   :  { %v631_v22 = vpop.permute.xlu1 %630 }
 0x416   :  { %v638_v24 = vmul.f32 %v631_v22, %v626_v23 }
 0x418   :  { %641 = vst.msk [vmem:[#allocation9] sm:$0xff] %vm126_vm1, %v638_v24 }
 0x419   :  { %v636_v25 = vpop.permute.xlu1 %635 }
 0x41a   :  { %v639_v27 = vmul.f32 %v636_v25, %v627_v26 }
 0x41c   :  { %642 = vst.msk [vmem:[#allocation9 + $0x8] sm:$0xff] %vm126_vm1, %v639_v27 }
 0x41d   :  { %804 = shalt.err (!%p801_p12)
}
 0x41e   :  { %s805_s27 = scalar_lea.hbm %s951_s4, 256 }
 0x41f   :  { %p806_p13 = scmp.ne.s32.totalorder %s951_s4, %s805_s27  ;;  %p809_p0 = scmp.lt.u32.totalorder %s805_s27, %s951_s4 }
 0x421   :  { %p811_p1 = pnand %p809_p0, %p806_p13 }
 0x423   :  { %814 = shalt.err (!%p811_p1)
}
 0x424   :  { %654 = dma.vmem_to_hbm [thread:$0]  %s649_s21, 256, %s951_s4, [#allocation8], %s820_s25, %s820_s25, %s821_s26  }
 0x425   :  { %817 = dma.done.wait [#allocation8], 256  }
 0x426   :  { %818 = vsyncadd [#allocation8], 4294967040 }
 0x427   :  { %658 = vsyncpa [#allocation7], 1 }
 0x428   :  { %659 = vsyncpa [#allocation8], 1 }

</bundles_post_ra>
